<compile_context>
chip_gen: v5e
topology: v5e:2x2
jax: 0.10.0
libtpu: 0.0.40
codegen_flags: <defaults>
</compile_context>

<pallas_src>
import functools

import jax
import jax.numpy as jnp
from jax.experimental import pallas as pl
from jax.experimental.pallas import tpu as pltpu

SUBLANE = 8
LANE = 128
_TARGET_TILE_BYTES = 2 * 1024 * 1024   # ~2 MiB per input tile (single f32 slab)
_MIN_GRID_STEPS = 8                    # keep DMA/compute overlap + cores busy


def _ffl_block_kernel(dist_ref, o_ref, *, alpha, log_matrix):
    """One block of flattened frequency planes -> one partial weighted sum.

    dist_ref: (s_blk, hw) f32, dist = |F(pred) - F(target)|^2 per frequency bin.
    """
    dist = dist_ref[...]

    # Online spectrum weight matrix: sqrt(dist) ** alpha (fast paths for 1 / 2).
    if alpha == 1.0:
        w = jnp.sqrt(dist)
    elif alpha == 2.0:
        w = dist
    else:
        w = jnp.where(dist > 0.0,
                      jnp.exp(jnp.float32(0.5 * alpha) * jnp.log(dist)),
                      jnp.float32(0.0))
    if log_matrix:
        w = jnp.log(w + 1.0)

    # batch_matrix=False normalisation, rewritten algebraically:
    #   sum_hw((w / max_hw(w)) * dist) == sum_hw(w * dist) / max_hw(w)
    # clip(., 0, 1) is a no-op (w <= its row max) and the only NaN case
    # (row max == 0) means w == 0 everywhere in the row -> contributes 0.
    row_sum = jnp.sum(w * dist, axis=-1, keepdims=True)    # (s_blk, 1)
    row_max = jnp.max(w, axis=-1, keepdims=True)           # (s_blk, 1)
    contrib = jnp.where(row_max > 0.0, row_sum / row_max, jnp.float32(0.0))

    # One partial sum per grid step, broadcast into this step's own lane-dense
    # (8, 128) output block (unmasked store; no cross-step serialisation).
    o_ref[...] = jnp.full((SUBLANE, LANE), jnp.sum(contrib), dtype=jnp.float32)


def _tensor2freq(x, patch_factor):
    """Patch split + 2-D orthonormal FFT, matching FocalFrequencyLoss.tensor2freq."""
    n, c, h, w = x.shape
    assert h % patch_factor == 0 and w % patch_factor == 0, (
        "Patch factor should be divisible by image height and width")
    ph, pw = h // patch_factor, w // patch_factor
    y = x.reshape(n, c, patch_factor, ph, patch_factor, pw)
    y = jnp.transpose(y, (0, 2, 4, 1, 3, 5))
    y = y.reshape(n, patch_factor * patch_factor, c, ph, pw)
    # TODO(synk): the FFT itself has no Pallas equivalent; it stays in XLA (wrapper).
    return jnp.fft.fft2(y, norm="ortho")


def focal_frequency_loss(pred, target, *, loss_weight=1.0, alpha=1.0,
                         patch_factor=1, ave_spectrum=False,
                         log_matrix=False, batch_matrix=False):
    """Pallas equivalent of FocalFrequencyLoss().forward(pred, target) (matrix=None)."""
    assert pred.shape == target.shape and pred.ndim == 4
    if batch_matrix:
        # TODO(synk): batch_matrix=True (global-max normalisation) needs a two-pass
        # kernel and is not implemented; the default config uses batch_matrix=False.
        raise NotImplementedError("batch_matrix=True is not supported")

    pf = _tensor2freq(pred, patch_factor)
    tf = _tensor2freq(target, patch_factor)
    if ave_spectrum:
        pf = jnp.mean(pf, axis=0, keepdims=True)
        tf = jnp.mean(tf, axis=0, keepdims=True)

    n, p, c, h, w = pf.shape
    s = n * p * c          # number of frequency planes (slices)
    hw = h * w             # flattened frequency plane (lane-dense last dim)

    # Single precomputed |dF|^2 slab (f32, lane-dense). XLA fuses this with the
    # FFT real/imag extraction; the kernel then reads 4 B/bin instead of 16 B/bin.
    d = pf - tf
    dre = jnp.real(d)
    dim = jnp.imag(d)
    dist = (dre * dre + dim * dim).reshape(s, hw).astype(jnp.float32)
    # TODO(synk): PyTorch detaches the weight matrix; add a stop_gradient split /
    # custom_vjp before differentiating through this loss for training.

    # Row-block: multiple of 8 sublanes, ~2 MiB per tile, and small enough to give
    # the grid at least _MIN_GRID_STEPS steps when S allows.
    s_ceil = pl.cdiv(s, SUBLANE) * SUBLANE
    blk_budget = max(SUBLANE, (_TARGET_TILE_BYTES // (4 * hw)) // SUBLANE * SUBLANE)
    blk_steps = max(SUBLANE, (s_ceil // _MIN_GRID_STEPS) // SUBLANE * SUBLANE)
    s_blk = int(max(SUBLANE, min(blk_budget, blk_steps, s_ceil)))

    pad = (-s) % s_blk
    if pad:
        # Zero rows are harmless: dist=0 -> w=0 -> row_max=0 -> contribute 0.
        dist = jnp.pad(dist, ((0, pad), (0, 0)))
    s_pad = s + pad
    grid = (s_pad // s_blk,)

    kernel = functools.partial(_ffl_block_kernel, alpha=float(alpha),
                               log_matrix=bool(log_matrix))

    # Only raise the scoped-VMEM limit when the forced 8-row minimum needs it
    # (very large H*W planes); normal tiles fit every generation's default.
    tile_bytes = s_blk * hw * 4
    vmem_needed = 2 * tile_bytes + 2 * SUBLANE * LANE * 4
    cp_kwargs = dict(dimension_semantics=("parallel",))
    if vmem_needed > (12 << 20):
        # TODO(synk): for planes where even an 8-row block exceeds ~48 MiB
        # double-buffered, the hw axis would need a two-pass (max then sum) split.
        cp_kwargs["vmem_limit_bytes"] = int(min(vmem_needed + (8 << 20), 48 << 20))

    trans_per_elem = ((1 if alpha == 1.0 else (0 if alpha == 2.0 else 2))
                      + (1 if log_matrix else 0))

    out = pl.pallas_call(
        kernel,
        out_shape=jax.ShapeDtypeStruct((grid[0] * SUBLANE, LANE), jnp.float32),
        grid_spec=pltpu.PrefetchScalarGridSpec(
            num_scalar_prefetch=0,
            grid=grid,
            in_specs=[pl.BlockSpec((s_blk, hw), lambda i: (i, 0))],
            out_specs=pl.BlockSpec((SUBLANE, LANE), lambda i: (i, 0)),
        ),
        compiler_params=pltpu.CompilerParams(**cp_kwargs),
        cost_estimate=pl.CostEstimate(
            flops=int(4 * s_pad * hw),
            transcendentals=int(trans_per_elem * s_pad * hw),
            bytes_accessed=int(4 * s_pad * hw + grid[0] * SUBLANE * LANE * 4),
        ),
    )(dist)

    partials = out[::SUBLANE, 0]                       # one scalar per grid block
    loss = jnp.sum(partials) / jnp.float32(s * hw)     # mean over (N,P,C,H,W)
    return loss * jnp.float32(loss_weight)


def _ffl_reference(pred, target, *, loss_weight=1.0, alpha=1.0, patch_factor=1,
                   ave_spectrum=False, log_matrix=False):
    """Pure-JAX reference mirroring the PyTorch FocalFrequencyLoss forward."""
    pf = _tensor2freq(pred, patch_factor)
    tf = _tensor2freq(target, patch_factor)
    if ave_spectrum:
        pf = jnp.mean(pf, axis=0, keepdims=True)
        tf = jnp.mean(tf, axis=0, keepdims=True)
    d = pf - tf
    dist = jnp.real(d) ** 2 + jnp.imag(d) ** 2
    wm = jnp.sqrt(dist) if alpha == 1.0 else jnp.sqrt(dist) ** alpha
    if log_matrix:
        wm = jnp.log(wm + 1.0)
    m = jnp.max(wm, axis=(-2, -1), keepdims=True)
    wm = wm / m
    wm = jnp.where(jnp.isnan(wm), 0.0, wm)
    wm = jnp.clip(wm, 0.0, 1.0)
    return jnp.mean(wm * dist) * loss_weight


if __name__ == "__main__":
    key = jax.random.PRNGKey(0)
    kx, ky = jax.random.split(key)
    # NCHW, matching the PyTorch convention for SR images
    pred = jax.random.normal(kx, (2, 4, 16, 16), dtype=jnp.float32)
    target = jax.random.normal(ky, (2, 4, 16, 16), dtype=jnp.float32)

    # Default config (alpha=1, no log, patch_factor=1).
    loss = jax.block_until_ready(focal_frequency_loss(pred, target))
    ref = _ffl_reference(pred, target)
    assert jnp.allclose(loss, ref, rtol=1e-5, atol=1e-6), (loss, ref)

    # Exercise the alpha fast path, log_matrix and patch splitting as well.
    loss2 = jax.block_until_ready(focal_frequency_loss(
        pred, target, alpha=2.0, patch_factor=2, log_matrix=True, loss_weight=0.5))
    ref2 = _ffl_reference(pred, target, alpha=2.0, patch_factor=2,
                          log_matrix=True, loss_weight=0.5)
    assert jnp.allclose(loss2, ref2, rtol=1e-5, atol=1e-6), (loss2, ref2)

    print("KERNEL_OK")
</pallas_src>

<mosaic_0001>
module attributes {stable_mosaic.version = 11 : i64} {
  func.func @_ffl_block_kernel(%arg0: i32, %arg1: memref<8x256xf32, #tpu.memory_space<vmem>>, %arg2: memref<8x128xf32, #tpu.memory_space<vmem>>) attributes {dimension_semantics = [#tpu.dimension_semantics<parallel>], iteration_bounds = array<i64: 1>, scalar_prefetch = 0 : i64, scratch_operands = 0 : i64, tpu.core_type = #tpu.core_type<tc>, window_params = [{transform_indices = @transform_0, window_bounds = array<i64: 8, 256>}, {transform_indices = @transform_1, window_bounds = array<i64: 8, 128>}]} {
    %c0 = arith.constant 0 : index
    %c0_0 = arith.constant 0 : index
    %0 = vector.load %arg1[%c0, %c0_0] : memref<8x256xf32, #tpu.memory_space<vmem>>, vector<8x256xf32>
    %1 = math.sqrt %0 : vector<8x256xf32>
    %2 = arith.mulf %1, %0 : vector<8x256xf32>
    %cst = arith.constant dense<0.000000e+00> : vector<8xf32>
    %3 = vector.multi_reduction <add>, %2, %cst [1] : vector<8x256xf32> to vector<8xf32>
    %4 = vector.shape_cast %3 : vector<8xf32> to vector<8x1xf32>
    %cst_1 = arith.constant dense<0xFF800000> : vector<8xf32>
    %5 = vector.multi_reduction <maximumf>, %1, %cst_1 [1] : vector<8x256xf32> to vector<8xf32>
    %6 = vector.shape_cast %5 : vector<8xf32> to vector<8x1xf32>
    %cst_2 = arith.constant 0.000000e+00 : f32
    %7 = vector.broadcast %cst_2 : f32 to vector<8x1xf32>
    %8 = arith.cmpf ogt, %6, %7 : vector<8x1xf32>
    %9 = arith.divf %4, %6 : vector<8x1xf32>
    %cst_3 = arith.constant 0.000000e+00 : f32
    %10 = vector.broadcast %cst_3 : f32 to vector<8x1xf32>
    %11 = arith.select %8, %9, %10 : vector<8x1xi1>, vector<8x1xf32>
    %12 = vector.shape_cast %11 : vector<8x1xf32> to vector<1x8x1xf32>
    %cst_4 = arith.constant dense<0.000000e+00> : vector<1xf32>
    %13 = vector.multi_reduction <add>, %12, %cst_4 [1, 2] : vector<1x8x1xf32> to vector<1xf32>
    %14 = vector.shape_cast %13 : vector<1xf32> to vector<1x1x1xf32>
    %15 = vector.extract %14[0, 0, 0] : f32 from vector<1x1x1xf32>
    %16 = vector.broadcast %15 : f32 to vector<8x128xf32>
    %c0_5 = arith.constant 0 : index
    %c0_6 = arith.constant 0 : index
    %17 = vector.load %arg2[%c0_5, %c0_6] : memref<8x128xf32, #tpu.memory_space<vmem>>, vector<8x128xf32>
    tpu.vector_store %arg2[%c0_5, %c0_6], %16 {strides = array<i32>} : memref<8x128xf32, #tpu.memory_space<vmem>>, vector<8x128xf32>,
    return
  }
  func.func @transform_0(%arg0: i32) -> (i32, i32) {
    %c0_i32 = arith.constant 0 : i32
    %c0_i32_0 = arith.constant 0 : i32
    return %arg0, %c0_i32 : i32, i32
  }
  func.func @transform_1(%arg0: i32) -> (i32, i32) {
    %c0_i32 = arith.constant 0 : i32
    %c0_i32_0 = arith.constant 0 : i32
    return %arg0, %c0_i32 : i32, i32
  }
}

</mosaic_0001>

<bundles_post_ra>
// kernel: tpu_custom_call.1
= control target key start
LH: loop header
LB: loop body
LE: loop exit
PB: predicated region body
PF: predicated region fallthrough
CT: control target
= control target key end

     0   :  { %6 = vsyncpa [#allocation3], 0  ;;  %s184_s0 = inlined_call_operand.hbm [shape: f32[8,256], index: 0, kind: input, shape index: {}]   ;;  %s185_s1 = inlined_call_operand.hbm [shape: f32[8,128], index: 1, kind: output, shape index: {}]  }
   0x1   :  { %7 = vsyncpa [#allocation4], 0  ;;  %s13_s8 = sshll.u32 %s184_s0, 4  ;;  %s166_s9 = smov [#allocation2]   ;;  %s14_s8 = int_to_ptr.hbm [resolvable:$true] %s13_s8 }
   0x2   :  { %s15_s10 = sshll.u32 %s166_s9, 4  ;;  %s16_s10 = int_to_ptr.vmem [resolvable:$true] %s15_s10 }
   0x3   :  { %18 = dma.hbm_to_vmem [thread:$0]  %s14_s8, 256, %s16_s10, [#allocation3]  }
   0x4   :  { %162 = dma.done.wait [#allocation3], 256  }
   0x5   :  { %163 = vsyncadd [#allocation3], 4294967040  ;;  %v23_v0 = vld [vmem:[#allocation2] sm:$0xff]  ;;  %v24_v1 = vld [vmem:[#allocation2 + $0x8] sm:$0xff]  ;;  %vm74_vm8 = vcmask 7168   ;;  %s167_s0 = smov [#allocation5]  }
   0x6   :  { %108 = vrsqrt.f32 %v23_v0  ;;  %vm32_vm0 = vcmp.eq.f32.partialorder %v23_v0, inf  ;;  %v35_v13 = vand.u32 2147483648, %v23_v0  ;;  %vm34_vm1 = vcmp.eq.f32.partialorder %v23_v0, 0.0  ;;  %s92_s11 = sshll.u32 %s167_s0, 4  ;;  %s94_s14 = sshll.u32 %s185_s1, 4  ;;  %s93_s11 = int_to_ptr.vmem [resolvable:$true] %s92_s11  ;;  %s95_s14 = int_to_ptr.hbm [resolvable:$true] %s94_s14 }
   0x7   :  { %110 = vrsqrt.f32 %v24_v1  ;;  %vm44_vm2 = vcmp.eq.f32.partialorder %v24_v1, inf  ;;  %v47_v16 = vand.u32 2147483648, %v24_v1  ;;  %vm46_vm3 = vcmp.eq.f32.partialorder %v24_v1, 0.0 }
   0xc   :  { %v109_v2 = vpop.eup %108 }
   0xd   :  { %v111_v3 = vpop.eup %110  ;;  %v26_v4 = vmul.f32 %v109_v2, %v23_v0 }
   0xe   :  { %v38_v5 = vmul.f32 %v111_v3, %v24_v1 }
   0xf   :  { %v27_v6 = vmul.f32 %v109_v2, %v26_v4 }
  0x10   :  { %v39_v7 = vmul.f32 %v111_v3, %v38_v5 }
  0x11   :  { %v28_v8 = vmul.f32 0.5, %v27_v6 }
  0x12   :  { %v40_v9 = vmul.f32 0.5, %v39_v7 }
  0x13   :  { %v29_v10 = vsub.f32 1.5, %v28_v8 }
  0x14   :  { %v41_v11 = vsub.f32 1.5, %v40_v9 }
  0x15   :  { %v30_v12 = vmul.f32 %v109_v2, %v29_v10 }
  0x16   :  { %v42_v14 = vmul.f32 %v111_v3, %v41_v11 }
  0x17   :  { %v31_v15 = vmul.f32 %v30_v12, %v23_v0 }
  0x18   :  { %v43_v17 = vmul.f32 %v42_v14, %v24_v1 }
  0x19   :  { %v33_v18 = vsel %vm32_vm0, %v23_v0, %v31_v15 }
  0x1a   :  { %v36_v19 = vsel %vm34_vm1, %v35_v13, %v33_v18  ;;  %v45_v20 = vsel %vm44_vm2, %v24_v1, %v43_v17 }
  0x1b   :  { %v48_v21 = vsel %vm46_vm3, %v47_v16, %v45_v20  ;;  %v49_v24 = vmul.f32 %v36_v19, %v23_v0 }
  0x1c   :  { %v54_v22 = vmax.f32 %v36_v19, %v48_v21  ;;  %v50_v23 = vmul.f32 %v48_v21, %v24_v1 }
  0x1e   :  { %55 = vmax.xlane.f32.xlu0 %v54_v22  ;;  %v51_v25 = vadd.f32 %v50_v23, %v49_v24 }
  0x26   :  { %52 = vadd.xlane.f32.xlu0 %v51_v25 }
  0x91   :  { %v56_v26 = vpop.xlane.xlu0 %55 }
  0x92   :  { %112 = vrcp.f32 %v56_v26  ;;  %v69_v30 = vand.u32 2147483648, %v56_v26  ;;  %v67_v32 = vand.u32 2147483647, %v56_v26  ;;  %vm63_vm5 = vweird.f32 %v56_v26 }
  0x93   :  { %vm57_vm9 = vcmp.gt.f32.partialorder %v56_v26, 0.0 }
  0x94   :  { %v70_v34 = vor.u32 1.1754944e-38, %v69_v30  ;;  %vm68_vm7 = vcmp.eq.f32.partialorder %v67_v32, 8.507059e+37 }
  0x98   :  { %v113_v27 = vpop.eup %112 }
  0x99   :  { %v59_v28 = vmul.f32 %v113_v27, %v56_v26  ;;  %vm64_vm4 = vweird.f32 %v113_v27  ;;  %v53_v35 = vpop.xlane.xlu0 %52 }
  0x9a   :  { %vm65_vm6 = vmor %vm63_vm5, %vm64_vm4 }
  0x9b   :  { %v60_v29 = vsub.f32 1.0, %v59_v28 }
  0x9d   :  { %v61_v31 = vmul.f32 %v113_v27, %v60_v29 }
  0x9f   :  { %v62_v33 = vadd.f32 %v113_v27, %v61_v31 }
  0xa1   :  { %v66_v36 = vsel %vm65_vm6, %v113_v27, %v62_v33 }
  0xa2   :  { %v71_v37 = vsel %vm68_vm7, %v70_v34, %v66_v36 }
  0xa3   :  { %v72_v38 = vmul.f32 %v71_v37, %v53_v35 }
  0xa5   :  { %v73_v39 = vsel %vm57_vm9, %v72_v38, 0.0 }
  0xa6   :  { %v75_v40 = vsel %vm74_vm8, %v73_v39, 0.0 }
  0xa7   :  { %76 = vadd.xlane.f32.xlu1 %v75_v40 }
 0x11a   :  { %v77_v41 = vpop.xlane.xlu1 %76 }
 0x11b   :  { %v78_v42 = vrot.slane %v77_v41, 4 }
 0x11d   :  { %v79_v43 = vadd.f32 %v78_v42, %v77_v41 }
 0x11f   :  { %v80_v44 = vrot.slane %v79_v43, 2 }
 0x121   :  { %v81_v45 = vadd.f32 %v80_v44, %v79_v43 }
 0x123   :  { %v82_v46 = vrot.slane %v81_v45, 1 }
 0x125   :  { %v83_v47 = vadd.f32 %v82_v46, %v81_v45 }
 0x127   :  { %104 = vpush %v83_v47 }
 0x158   :  { %s105_s15 = spop %104 }
 0x159   :  { %v85_v48 = vstv %s105_s15 }
 0x15a   :  { %86 = vst [vmem:[#allocation5] sm:$0xff] %v85_v48 }
 0x15b   :  { %97 = dma.vmem_to_hbm [thread:$0]  %s93_s11, 128, %s95_s14, [#allocation4]  }
 0x15c   :  { %164 = dma.done.wait [#allocation4], 128  }
 0x15d   :  { %165 = vsyncadd [#allocation4], 4294967168 }
 0x15e   :  { %102 = vsyncpa [#allocation3], 1 }
 0x15f   :  { %103 = vsyncpa [#allocation4], 1 }

</bundles_post_ra>
